<compile_context>
chip_gen: v7x
topology: tpu7x:2x2x1
jax: 0.10.0
libtpu: 0.0.40
codegen_flags: <defaults>
</compile_context>

<pallas_src>
import functools

import jax
import jax.numpy as jnp
from jax import lax
from jax.experimental import pallas as pl
from jax.experimental.pallas import tpu as pltpu


def _round_up(x: int, m: int) -> int:
    return (x + m - 1) // m * m


# --------------------------------------------------------------------------
# Kernels
# --------------------------------------------------------------------------
def mlp_kernel_single_k(x_ref, w_ref, b_ref, o_ref):
    """Whole K in one block: dot + bias + ReLU + store. No scratch, no pl.when.

    x_ref: (tm, K)   activation tile (compute dtype)
    w_ref: (tn, K)   weight tile, PyTorch (out, in) layout (compute dtype)
    b_ref: (1,  tn)  bias tile (f32)
    o_ref: (tm, tn)  output tile
    """
    acc = lax.dot_general(
        x_ref[...],
        w_ref[...],
        dimension_numbers=(((1,), (1,)), ((), ())),  # x @ W^T, no HBM transpose
        preferred_element_type=jnp.float32,
    )
    o_ref[...] = jnp.maximum(acc + b_ref[...], 0.0).astype(o_ref.dtype)


def mlp_kernel_multi_k(x_ref, w_ref, b_ref, o_ref, acc_ref):
    """K split across the innermost grid axis; f32 VMEM accumulator."""
    k = pl.program_id(2)

    prod = lax.dot_general(
        x_ref[...],
        w_ref[...],
        dimension_numbers=(((1,), (1,)), ((), ())),
        preferred_element_type=jnp.float32,
    )

    @pl.when(k == 0)
    def _first():           # direct store: no zero-init read-modify-write
        acc_ref[...] = prod

    @pl.when(k > 0)
    def _accumulate():
        acc_ref[...] += prod

    @pl.when(k == pl.num_programs(2) - 1)
    def _epilogue():        # single lane-dense store per output tile
        o_ref[...] = jnp.maximum(acc_ref[...] + b_ref[...], 0.0).astype(o_ref.dtype)


# --------------------------------------------------------------------------
# Wrapper
# --------------------------------------------------------------------------
def mlp_forward(x, weight, bias, *, compute_dtype=jnp.bfloat16,
                tm_max=512, tn_max=512, tk_max=1024):
    """Forward of nn.Linear(IN, H) + ReLU.

    x:      (B, IN)  float32
    weight: (H, IN)  float32 (PyTorch nn.Linear convention, NOT transposed)
    bias:   (H,)     float32
    returns (B, H)   x.dtype
    """
    B, IN = x.shape
    H, IN_w = weight.shape
    assert IN == IN_w, "weight inner dim must match x"
    out_dtype = x.dtype

    itemsize = jnp.dtype(compute_dtype).itemsize
    out_itemsize = jnp.dtype(out_dtype).itemsize
    sublane = 8 * max(1, 4 // itemsize)          # 8 (f32), 16 (bf16), 32 (8-bit)

    # ---- M (batch): one tile covers the batch whenever it fits -----------
    b_pad = _round_up(B, sublane)
    tm = min(tm_max, b_pad)
    b_pad = _round_up(b_pad, tm)
    grid_m = b_pad // tm

    # ---- K (input features): do NOT pad the weight's K if one block holds
    # it (block dim == full array dim is legal even when not 128-aligned) ---
    if IN <= tk_max:
        tk = IN
        in_pad = IN
    else:
        tk = 512
        in_pad = _round_up(IN, tk)
    grid_k = in_pad // tk

    # ---- N (hidden): 128-multiple tiles; keep >=2 N blocks when the M grid
    # collapses so both v7x TensorCores have work ---------------------------
    h_pad = _round_up(H, 128)
    n_units = h_pad // 128
    max_units = max(1, min(n_units, tn_max // 128))
    best = 1
    for cand in range(1, max_units + 1):
        if n_units % cand:
            continue
        if grid_m == 1 and n_units >= 2 and n_units // cand < 2:
            continue
        best = cand
    tn = best * 128
    grid_n = h_pad // tn

    # ---- pad (batch rows / hidden cols only; K untouched in the common
    # case) and cast to the compute dtype -----------------------------------
    if (b_pad, in_pad) != (B, IN):
        x = jnp.pad(x, ((0, b_pad - B), (0, in_pad - IN)))
    if (h_pad, in_pad) != (H, IN):
        weight = jnp.pad(weight, ((0, h_pad - H), (0, in_pad - IN)))
    if h_pad != H:
        bias = jnp.pad(bias, (0, h_pad - H))

    x = x.astype(compute_dtype)
    weight = weight.astype(compute_dtype)
    b2d = bias.reshape(1, h_pad).astype(jnp.float32)

    # ---- advisory cost + explicit VMEM budget ------------------------------
    cost = pl.CostEstimate(
        flops=2 * b_pad * in_pad * h_pad,
        transcendentals=0,
        bytes_accessed=(b_pad * in_pad * itemsize * grid_n      # x per N tile
                        + h_pad * in_pad * itemsize * grid_m    # W per M tile
                        + h_pad * 4
                        + b_pad * h_pad * out_itemsize),
    )
    vmem_est = (2 * (tm * tk + tn * tk) * itemsize              # dbl-buffered in
                + 2 * tn * 4                                    # bias
                + 2 * tm * tn * out_itemsize                    # out
                + (tm * tn * 4 if grid_k > 1 else 0))           # acc scratch
    vmem_limit = int(max(32 * 1024 * 1024,
                         min(2 * vmem_est + (1 << 20), 48 * 1024 * 1024)))

    # ---- pallas_call -------------------------------------------------------
    if grid_k == 1:
        grid = (grid_m, grid_n)
        in_specs = [
            pl.BlockSpec((tm, tk), lambda i, j: (i, 0)),    # x
            pl.BlockSpec((tn, tk), lambda i, j: (j, 0)),    # weight (H, IN)
            pl.BlockSpec((1, tn), lambda i, j: (0, j)),     # bias
        ]
        out_specs = pl.BlockSpec((tm, tn), lambda i, j: (i, j))
        scratch = []
        kernel = mlp_kernel_single_k
        dims = ("parallel", "parallel")
    else:
        grid = (grid_m, grid_n, grid_k)
        in_specs = [
            pl.BlockSpec((tm, tk), lambda i, j, k: (i, k)),
            pl.BlockSpec((tn, tk), lambda i, j, k: (j, k)),
            pl.BlockSpec((1, tn), lambda i, j, k: (0, j)),
        ]
        out_specs = pl.BlockSpec((tm, tn), lambda i, j, k: (i, j))
        scratch = [pltpu.VMEM((tm, tn), jnp.float32)]
        kernel = mlp_kernel_multi_k
        dims = ("parallel", "parallel", "arbitrary")

    out_padded = pl.pallas_call(
        kernel,
        out_shape=jax.ShapeDtypeStruct((b_pad, h_pad), out_dtype),
        grid_spec=pltpu.PrefetchScalarGridSpec(
            num_scalar_prefetch=0,
            grid=grid,
            in_specs=in_specs,
            out_specs=out_specs,
            scratch_shapes=scratch,
        ),
        compiler_params=pltpu.CompilerParams(
            dimension_semantics=dims,
            vmem_limit_bytes=vmem_limit,
        ),
        cost_estimate=cost,
    )(x, weight, b2d)

    if (b_pad, h_pad) != (B, H):
        out_padded = out_padded[:B, :H]
    return out_padded


def mlp_reference(x, weight, bias):
    return jnp.maximum(x @ weight.T + bias, 0.0)


if __name__ == "__main__":
    # Shapes consistent with the module: batch=8, input_size=32, hidden=512.
    batch, input_size, hidden_size = 8, 32, 512

    key = jax.random.PRNGKey(0)
    kx, kw, kb = jax.random.split(key, 3)

    x = jax.random.normal(kx, (batch, input_size), dtype=jnp.float32)
    bound = 1.0 / float(input_size) ** 0.5
    weight = jax.random.uniform(
        kw, (hidden_size, input_size), minval=-bound, maxval=bound,
        dtype=jnp.float32)
    bias = jax.random.uniform(
        kb, (hidden_size,), minval=-bound, maxval=bound, dtype=jnp.float32)

    ref = mlp_reference(x, weight, bias)

    # f32 path: bit-close check against the PyTorch-equivalent reference.
    fwd_f32 = jax.jit(functools.partial(mlp_forward, compute_dtype=jnp.float32))
    out_f32 = jax.block_until_ready(fwd_f32(x, weight, bias))
    assert out_f32.shape == (batch, hidden_size)
    assert jnp.allclose(out_f32, ref, atol=1e-4, rtol=1e-5), (
        float(jnp.max(jnp.abs(out_f32 - ref))))

    # bf16 path (default, production): halved weight HBM traffic, bf16 MXU.
    fwd_bf16 = jax.jit(mlp_forward)
    out_bf16 = jax.block_until_ready(fwd_bf16(x, weight, bias))
    assert out_bf16.shape == (batch, hidden_size)
    assert jnp.allclose(out_bf16, ref, atol=3e-2, rtol=3e-2), (
        float(jnp.max(jnp.abs(out_bf16 - ref))))

    print("KERNEL_OK")
</pallas_src>

<mosaic_0001>
module attributes {stable_mosaic.version = 11 : i64} {
  func.func @mlp_kernel_single_k(%arg0: i32, %arg1: i32, %arg2: memref<8x32xf32, #tpu.memory_space<vmem>>, %arg3: memref<256x32xf32, #tpu.memory_space<vmem>>, %arg4: memref<1x256xf32, #tpu.memory_space<vmem>>, %arg5: memref<8x256xf32, #tpu.memory_space<vmem>>) attributes {dimension_semantics = [#tpu.dimension_semantics<parallel>, #tpu.dimension_semantics<parallel>], iteration_bounds = array<i64: 1, 2>, scalar_prefetch = 0 : i64, scratch_operands = 0 : i64, tpu.core_type = #tpu.core_type<tc>, window_params = [{transform_indices = @transform_0, window_bounds = array<i64: 8, 32>}, {transform_indices = @transform_1, window_bounds = array<i64: 256, 32>}, {transform_indices = @transform_2, window_bounds = array<i64: 1, 256>}, {transform_indices = @transform_3, window_bounds = array<i64: 8, 256>}]} {
    %c0 = arith.constant 0 : index
    %c0_0 = arith.constant 0 : index
    %0 = vector.load %arg2[%c0, %c0_0] : memref<8x32xf32, #tpu.memory_space<vmem>>, vector<8x32xf32>
    %c0_1 = arith.constant 0 : index
    %c0_2 = arith.constant 0 : index
    %1 = vector.load %arg3[%c0_1, %c0_2] : memref<256x32xf32, #tpu.memory_space<vmem>>, vector<256x32xf32>
    %cst = arith.constant dense<0.000000e+00> : vector<8x256xf32>
    %2 = tpu.matmul %0, %1, %cst {dimension_numbers = #tpu.dot_dimension_numbers<[1], [1], [0], [0], [0, 0, 1, 0], [], []>} : vector<8x32xf32>, vector<256x32xf32>, vector<8x256xf32> -> vector<8x256xf32>
    %c0_3 = arith.constant 0 : index
    %c0_4 = arith.constant 0 : index
    %3 = vector.load %arg4[%c0_3, %c0_4] : memref<1x256xf32, #tpu.memory_space<vmem>>, vector<1x256xf32>
    %4 = vector.broadcast %3 : vector<1x256xf32> to vector<8x256xf32>
    %5 = arith.addf %2, %4 : vector<8x256xf32>
    %cst_5 = arith.constant 0.000000e+00 : f32
    %6 = vector.broadcast %cst_5 : f32 to vector<8x256xf32>
    %7 = arith.maximumf %5, %6 : vector<8x256xf32>
    %c0_6 = arith.constant 0 : index
    %c0_7 = arith.constant 0 : index
    %8 = vector.load %arg5[%c0_6, %c0_7] : memref<8x256xf32, #tpu.memory_space<vmem>>, vector<8x256xf32>
    tpu.vector_store %arg5[%c0_6, %c0_7], %7 {strides = array<i32>} : memref<8x256xf32, #tpu.memory_space<vmem>>, vector<8x256xf32>,
    return
  }
  func.func @transform_0(%arg0: i32, %arg1: i32) -> (i32, i32) {
    %c0_i32 = arith.constant 0 : i32
    %c0_i32_0 = arith.constant 0 : i32
    return %arg0, %c0_i32 : i32, i32
  }
  func.func @transform_1(%arg0: i32, %arg1: i32) -> (i32, i32) {
    %c0_i32 = arith.constant 0 : i32
    %c0_i32_0 = arith.constant 0 : i32
    return %arg1, %c0_i32 : i32, i32
  }
  func.func @transform_2(%arg0: i32, %arg1: i32) -> (i32, i32) {
    %c0_i32 = arith.constant 0 : i32
    %c0_i32_0 = arith.constant 0 : i32
    return %c0_i32, %arg1 : i32, i32
  }
  func.func @transform_3(%arg0: i32, %arg1: i32) -> (i32, i32) {
    %c0_i32 = arith.constant 0 : i32
    return %arg0, %arg1 : i32, i32
  }
}

</mosaic_0001>

<bundles_post_ra>
// kernel: mlp_forward.1
= control target key start
LH: loop header
LB: loop body
LE: loop exit
PB: predicated region body
PF: predicated region fallthrough
CT: control target
= control target key end

     0   :  { %8 = vsyncpa [#allocation3], 0  ;;  %s1036_s0 = inlined_call_operand.vmem [shape: f32[8,32], index: 0, kind: input, shape index: {}]   ;;  %s1037_s1 = inlined_call_operand.vmem [shape: f32[512,32], index: 1, kind: input, shape index: {}]   ;;  %s1038_s2 = inlined_call_operand.vmem [shape: f32[1,512], index: 2, kind: input, shape index: {}]   ;;  %s1039_s3 = inlined_call_operand.hbm [shape: f32[8,512], index: 3, kind: output, shape index: {}]  }
   0x1   :  { %10 = vsyncpa [#allocation3 + $0x1], 0  ;;  %s840_s12 = smov 0   ;;  %s842_s13 = smov 0  }
   0x2   :  { %s844_s14 = smov 0   ;;  %s846_s15 = smov 0  }
   0x3   :  { %s848_s16 = smov 0   ;;  %s850_s17 = smov 0  }
   0x4 LB: > { %s553_s18 = sadd.s32 4294967295, %s817_s17   ;;  %s554_s19 = sadd.s32 4294967294, %s817_s17   ;;  %s817_s17 = sphi %s850_s17, %s16_s17   ;;  %s813_s16 = sphi %s848_s16, %s1048_s16   ;;  %s809_s15 = sphi %s846_s15, %s1047_s15   ;;  %s805_s14 = sphi %s844_s14, %s1046_s14   ;;  %s801_s13 = sphi %s842_s13, %s1045_s13   ;;  %s797_s12 = sphi %s840_s12, %s1044_s12  }
   0x5   : > { %s25_s20 = sadd.s32 1, %s813_s16  ;;  %s115_s21 = sadd.s32 1, %s805_s14 }
   0x6   : > { %p26_p0 = scmp.ge.s32.totalorder %s25_s20, 2  ;;  %p125_p1 = scmp.ne.s32.totalorder %s805_s14, %s801_s13 }
   0x7   : > { %p126_p2 = scmp.eq.s32.totalorder %s553_s18, 1  ;;  %p131_p3 = scmp.ne.s32.totalorder %s801_s13, %s797_s12 }
   0x8   : > { %s1050_s20 = smov (%p26_p0, %s25_s20), 0  ;;  %p132_p5 = scmp.eq.s32.totalorder %s554_s19, 1 }
   0x9   : > { %p880_p4 = por %p126_p2, %p125_p1  ;;  %s111_s23 = ssub.s32 %s813_s16, %s1050_s20 }
   0xa   : > { %p558_p6 = scmp.ge.s32.totalorder %s817_s17, 1  ;;  %p113_p7 = scmp.eq.s32.totalorder %s111_s23, 0 }
   0xb   : > { %p887_p8 = por %p132_p5, %p131_p3  ;;  %p174_p9 = scmp.lt.s32.totalorder %s817_s17, 3 }
   0xc   : > { %s893_s25 = scalar_select %p113_p7, %s805_s14, %s115_s21  }
   0xd   : > { %p175_p10 = pnand %p558_p6, %p174_p9 }
   0xe   : > { %s560_s26 = sshll.u32 (!%p175_p10), %s809_s15, 5  ;;  %vm267_vm0 = vcmask (!%p175_p10), 261120   ;;  %v899_v0 = vld [vmem:[%s1036_s0] sm:$0xff] (!%p175_p10)  ;;  %s562_s6 = sshll.u32 (!%p175_p10), %s809_s15, 1  ;;  %v257_v50 = vlaneseq (!%p175_p10) }
   0xf   : > { %178 = sbr.rel (%p175_p10) target bundleno = 323 (0x143), region = 32  ;;  %p211_p11 = scmp.lt.s32.totalorder (!%p175_p10), %s560_s26, 63  ;;  %634 = vmatprep.mubr.msk.f32.mxu0 (!%p175_p10), %vm267_vm0, %v899_v0  ;;  %vm910_vm1 = vmpackc.low (!%p175_p10), %vm267_vm0, %vm267_vm0 }
  0x10   : > { %p217_p12 = scmp.lt.s32.totalorder (!%p175_p10), %s562_s6, 3  ;;  %v258_v51 = vshrl.u32 (!%p175_p10), %v257_v50, 7  ;;  %s203_s10 = sand.u32 (!%p175_p10), 1, %s801_s13  }
  0x11   : > { %s559_s11 = sshll.u32 (!%p175_p10), %s203_s10, 4  ;;  %s601_s18 = sshll.u32 (!%p175_p10), %s809_s15, 8 }
  0x12   : > { %v259_v52 = vsub.s32 (!%p175_p10), 0, %v258_v51  ;;  %v263_v54 = vsub.s32 (!%p175_p10), 1, %v258_v51  ;;  %s205_s19 = scalar_lea.vmem (!%p175_p10), [#allocation2], %s559_s11  ;;  %s989_s27 = scalar_lea.hbm (!%p175_p10), %s1039_s3, %s601_s18 }
  0x13   : > { %s459_s21 = sshll.u32 (!%p175_p10), %s205_s19, 4  ;;  %s443_s28 = scalar_lea.sflag (!%p175_p10), [#allocation3], %s203_s10  ;;  %s991_s21 = int_to_ptr.vmem [resolvable:$true] %s459_s21 }
  0x14   : > { %s819_s15 = smov (!%p175_p10), [#allocation2]  }
  0x15   : > { %s743_s30 = sshll.u32 (!%p175_p10), %s819_s15, 4  ;;  %s744_s30 = int_to_ptr.vmem [resolvable:$false] %s743_s30 }
  0x16   : > { %s1052_s26 = smov (!%p211_p11, %s560_s26), 63  ;;  %s1054_s6 = smov (!%p217_p12, %s562_s6), 3 }
  0x17   : > { %s561_s29 = sshll.u32 %s1052_s26, 3  ;;  %s219_s9 = scalar_lea.vmem %s1038_s2, %s1054_s6 }
  0x18   : > { %s906_s5 = scalar_lea.vmem %s1037_s1, %s561_s29  ;;  %v255_v53 = vld [vmem:[%s219_s9] sm:$0x3]  ;;  %s739_s29 = scalar_lea.vmem %s991_s21, 256 }
  0x19   : > { %v239_v2 = vld [vmem:[%s906_s5 + $0x80] sm:$0xff]  ;;  %v240_v3 = vld [vmem:[%s906_s5 + $0x88] sm:$0xff]  ;;  %v241_v7 = vld [vmem:[%s906_s5 + $0x90] sm:$0xff]  ;;  %v260_v55 = vrot.slane %v255_v53, %v259_v52  ;;  %v264_v56 = vrot.slane %v255_v53, %v263_v54  ;;  %p740_p13 = scmp.ne.s32.totalorder %s991_s21, %s739_s29  ;;  %s745_s4 = scalar_lea.vmem %s744_s30, 512 }
  0x1a   : > { %v223_v4 = vld [vmem:[%s906_s5] sm:$0xff]  ;;  %v636_v5 = vpack.c.bf16 %v240_v3, %v239_v2  ;;  %v224_v6 = vld [vmem:[%s906_s5 + $0x8] sm:$0xff]  ;;  %v242_v8 = vld [vmem:[%s906_s5 + $0x98] sm:$0xff]  ;;  %p746_p2 = scmp.lt.s32.totalorder %s991_s21, %s744_s30  ;;  %p747_p3 = scmp.lt.s32.totalorder %s745_s4, %s739_s29 }
  0x1b   : > { %v639_v9 = vpack.c.bf16 %v224_v6, %v223_v4  ;;  %v642_v10 = vpack.c.bf16 %v242_v8, %v241_v7  ;;  %v225_v11 = vld [vmem:[%s906_s5 + $0x10] sm:$0xff]  ;;  %v226_v12 = vld [vmem:[%s906_s5 + $0x18] sm:$0xff]  ;;  %v243_v13 = vld [vmem:[%s906_s5 + $0xa0] sm:$0xff]  ;;  %p741_p0 = pnand %p740_p13, %p880_p4 }
  0x1c   : > { %638 = vmatprep.subr.msk.bf16.mxu0 %vm910_vm1, %v636_v5  ;;  %v244_v14 = vld [vmem:[%s906_s5 + $0xa8] sm:$0xff]  ;;  %v645_v15 = vpack.c.bf16 %v226_v12, %v225_v11  ;;  %v227_v17 = vld [vmem:[%s906_s5 + $0x20] sm:$0xff]  ;;  %v245_v19 = vld [vmem:[%s906_s5 + $0xb0] sm:$0xff]  ;;  %p748_p5 = por %p747_p3, %p746_p2 }
  0x1d   : > { %641 = vmatpush3.bf16.xpose.msk.msra.mxu0 %vm910_vm1, %v639_v9  ;;  %v648_v16 = vpack.c.bf16 %v244_v14, %v243_v13  ;;  %v228_v18 = vld [vmem:[%s906_s5 + $0x28] sm:$0xff]  ;;  %v246_v20 = vld [vmem:[%s906_s5 + $0xb8] sm:$0xff]  ;;  %v229_v23 = vld [vmem:[%s906_s5 + $0x30] sm:$0xff]  ;;  %p742_p1 = pneg %p741_p0 }
  0x1e   : > { %644 = vmatprep.subr.msk.bf16.mxu0 %vm910_vm1, %v642_v10  ;;  %v651_v21 = vpack.c.bf16 %v228_v18, %v227_v17  ;;  %v654_v22 = vpack.c.bf16 %v246_v20, %v245_v19  ;;  %v230_v24 = vld [vmem:[%s906_s5 + $0x38] sm:$0xff]  ;;  %v247_v25 = vld [vmem:[%s906_s5 + $0xc0] sm:$0xff]  ;;  %v248_v26 = vld [vmem:[%s906_s5 + $0xc8] sm:$0xff] }
  0x1f   : > { %v657_v27 = vpack.c.bf16 %v230_v24, %v229_v23  ;;  %v660_v28 = vpack.c.bf16 %v248_v26, %v247_v25  ;;  %v231_v29 = vld [vmem:[%s906_s5 + $0x40] sm:$0xff]  ;;  %v232_v30 = vld [vmem:[%s906_s5 + $0x48] sm:$0xff]  ;;  %v249_v31 = vld [vmem:[%s906_s5 + $0xd0] sm:$0xff]  ;;  %p749_p6 = pnand %p748_p5, %p742_p1 }
  0x20   : > { %v250_v32 = vld [vmem:[%s906_s5 + $0xd8] sm:$0xff]  ;;  %v663_v33 = vpack.c.bf16 %v232_v30, %v231_v29  ;;  %v233_v35 = vld [vmem:[%s906_s5 + $0x50] sm:$0xff]  ;;  %v251_v37 = vld [vmem:[%s906_s5 + $0xe0] sm:$0xff] }
  0x21   : > { %v666_v34 = vpack.c.bf16 %v250_v32, %v249_v31  ;;  %v234_v36 = vld [vmem:[%s906_s5 + $0x58] sm:$0xff]  ;;  %v252_v38 = vld [vmem:[%s906_s5 + $0xe8] sm:$0xff]  ;;  %v235_v41 = vld [vmem:[%s906_s5 + $0x60] sm:$0xff] }
  0x22   : > { %v669_v39 = vpack.c.bf16 %v234_v36, %v233_v35  ;;  %v672_v40 = vpack.c.bf16 %v252_v38, %v251_v37  ;;  %v236_v42 = vld [vmem:[%s906_s5 + $0x68] sm:$0xff]  ;;  %v253_v43 = vld [vmem:[%s906_s5 + $0xf0] sm:$0xff]  ;;  %v254_v44 = vld [vmem:[%s906_s5 + $0xf8] sm:$0xff] }
  0x23   : > { %v675_v45 = vpack.c.bf16 %v236_v42, %v235_v41  ;;  %v678_v46 = vpack.c.bf16 %v254_v44, %v253_v43  ;;  %v237_v47 = vld [vmem:[%s906_s5 + $0x70] sm:$0xff]  ;;  %v238_v48 = vld [vmem:[%s906_s5 + $0x78] sm:$0xff] }
  0x24   : > { %v681_v49 = vpack.c.bf16 %v238_v48, %v237_v47 }
  0x25   : > { %647 = vmatpush3.bf16.xpose.msk.msra.mxu0 %vm910_vm1, %v645_v15 }
  0x26   : > { %650 = vmatprep.subr.msk.bf16.mxu0 %vm910_vm1, %v648_v16 }
  0x2d   : > { %653 = vmatpush3.bf16.xpose.msk.msra.mxu0 %vm910_vm1, %v651_v21 }
  0x2e   : > { %656 = vmatprep.subr.msk.bf16.mxu0 %vm910_vm1, %v654_v22 }
  0x35   : > { %659 = vmatpush3.bf16.xpose.msk.msra.mxu0 %vm910_vm1, %v657_v27 }
  0x36   : > { %662 = vmatprep.subr.msk.bf16.mxu0 %vm910_vm1, %v660_v28 }
  0x3d   : > { %665 = vmatpush3.bf16.xpose.msk.msra.mxu0 %vm910_vm1, %v663_v33 }
  0x3e   : > { %668 = vmatprep.subr.msk.bf16.mxu0 %vm910_vm1, %v666_v34 }
  0x45   : > { %671 = vmatpush3.bf16.xpose.msk.msra.mxu0 %vm910_vm1, %v669_v39 }
  0x46   : > { %674 = vmatprep.subr.msk.bf16.mxu0 %vm910_vm1, %v672_v40 }
  0x4d   : > { %677 = vmatpush3.bf16.xpose.msk.msra.mxu0 %vm910_vm1, %v675_v45 }
  0x4e   : > { %680 = vmatprep.subr.msk.bf16.mxu0 %vm910_vm1, %v678_v46 }
  0x55   : > { %683 = vmatpush3.bf16.xpose.msk.msra.mxu0 %vm910_vm1, %v681_v49 }
  0x5c   : > { %635 = vmatmul.mubr.msk.f32.vlgmr.msra.gmra.mrb[0].mxu0 %vm267_vm0, %v899_v0 }
 0x12f   : > { %v433_v57 = vpop.f32.mrb[0].mxu0 }
 0x130   : > { %v434_v58 = vadd.f32 %v433_v57, %v260_v55  ;;  %v435_v59 = vpop.f32.mrb[1].mxu0 }
 0x131   : > { %v436_v60 = vadd.f32 %v435_v59, %v264_v56 }
 0x132   : > { %v438_v61 = vmax.f32 %v434_v58, 0.0 }
 0x133   : > { %v439_v62 = vmax.f32 %v436_v60, 0.0 }
 0x134   : > { %440 = vst [vmem:[%s205_s19] sm:$0xff] %v438_v61 }
 0x135   : > { %441 = vst [vmem:[%s205_s19 + $0x8] sm:$0xff] %v439_v62 }
 0x136   : > { %752 = shalt.err (!%p749_p6)
}
 0x137   : > { %s753_s5 = scalar_lea.hbm %s989_s27, 256  ;;  %s757_s8 = scalar_lea.hbm %s1039_s3, 512 }
 0x138   : > { %p754_p7 = scmp.ne.s32.totalorder %s989_s27, %s753_s5  ;;  %p758_p11 = scmp.lt.u32.totalorder %s989_s27, %s1039_s3 }
 0x139   : > { %p759_p12 = scmp.lt.u32.totalorder %s757_s8, %s753_s5  ;;  %p761_p0 = scmp.lt.u32.totalorder %s753_s5, %s989_s27 }
 0x13a   : > { %p755_p9 = pnand %p754_p7, %p880_p4 }
 0x13b   : > { %p760_p13 = por %p759_p12, %p758_p11 }
 0x13c   : > { %p756_p10 = pneg %p755_p9 }
 0x13d   : > { %p762_p1 = por %p761_p0, %p760_p13 }
 0x13f   : > { %p763_p2 = pnand %p762_p1, %p756_p10 }
 0x141   : > { %766 = shalt.err (!%p763_p2)
}
 0x142   : > { %684 = dma.vmem_to_hbm [thread:$0]  (%p880_p4), %s991_s21, 256, %s989_s27, %s443_s28  }
 0x143 PF: > { %p690_p3 = scmp.ge.s32.totalorder %s817_s17, 2  ;;  %s471_s11 = sand.u32 1, %s797_s12  }
 0x144   : > { %s472_s18 = scalar_lea.sflag [#allocation3], %s471_s11 }
 0x145   : > { %p687_p5 = pnand %p690_p3, %p887_p8 }
 0x147   : > { %792 = dma.done.wait (!%p687_p5), %s472_s18, 256  }
 0x148   : > { %794 = vsyncadd (!%p687_p5), %s472_s18, 4294967040  ;;  %s16_s17 = sadd.s32 1, %s817_s17   ;;  %s1044_s12 = smov %s801_s13 }
 0x149   : > { %p13_p6 = scmp.ge.s32.totalorder %s16_s17, 4   ;;  %s1045_s13 = smov %s805_s14 }
 0x14a   : > { %s1046_s14 = smov %s893_s25  ;;  %s1047_s15 = smov %s813_s16 }
 0x14b   : > { %s1048_s16 = smov %s1050_s20  ;;  %15 = sbr.rel (!%p13_p6) target bundleno = 4 (0x4), region = 73 }
 0x152   :  { %477 = vsyncpa [#allocation3], 1 }
 0x153   :  { %479 = vsyncpa [#allocation3 + $0x1], 1 }

</bundles_post_ra>
